<compile_context>
chip_gen: v7x
topology: tpu7x:2x2x1
jax: 0.10.0
libtpu: 0.0.40
codegen_flags: <defaults>
</compile_context>

<pallas_src>
import jax
import jax.numpy as jnp
from jax import lax
from jax.experimental import pallas as pl
from jax.experimental.pallas import tpu as pltpu

HIDDEN = 64
OUT = 1
# Conservative working-set budget: 2x double-buffered x tile + (tile_b, H) f32
# hidden temp (H pads to 128 lanes).  12 MiB fits v5e's 16 MiB scoped default
# and leaves headroom inside v7x's 32 MiB scoped / 64 MiB physical VMEM.
VMEM_BUDGET_BYTES = 12 * 1024 * 1024
VMEM_LIMIT_BYTES = 32 * 1024 * 1024


def _round_up(x: int, m: int) -> int:
    return ((x + m - 1) // m) * m


def _pick_tile(batch: int, d: int) -> int:
    """Batch-tile size: VMEM-budgeted, multiple of 128 when tiling, >=2 steps."""
    d_pad = max(_round_up(d, 128), 128)          # x lanes pad to 128
    h_pad = _round_up(HIDDEN, 128)               # hidden lanes pad to 128
    bytes_per_row = 4 * (2 * d_pad + h_pad)      # 2x-buffered x + hidden temp (f32)
    budget_tile = VMEM_BUDGET_BYTES // bytes_per_row
    budget_tile = max(1024, min(budget_tile, 16384))
    budget_tile = (budget_tile // 128) * 128
    # Guarantee >=2 grid steps for moderate B so both v7x TensorCores get work.
    two_step = _round_up(pl.cdiv(batch, 2), 128)
    tile = min(budget_tile, two_step)
    if tile >= batch:
        return batch                              # single full-extent block (always legal)
    return tile                                   # multiple of 128; last block is masked


def _basic_mlp_kernel(x_ref, w1_ref, b1_ref, w2_ref, b2_ref, o_ref):
    # Layer 1 on the MXU, fp32 accumulation: (TB, D) @ (D, H) -> (TB, H).
    h = jnp.dot(x_ref[...], w1_ref[...], preferred_element_type=jnp.float32)
    h = jnp.maximum(h + b1_ref[...], 0.0)                       # (TB, H) + (1, H)
    # Layer 2, born lane-dense: (1, H) contracted with (TB, H) over H -> (1, TB).
    # MXU is idle after layer 1, so this M=1 matmul is free and feeds a
    # lane-dense row for the bias add / sigmoid / store.
    y = lax.dot_general(w2_ref[...], h, (((1,), (1,)), ((), ())),
                        preferred_element_type=jnp.float32)      # (1, TB)
    y = y + b2_ref[0]                                            # scalar bias from SMEM
    o_ref[...] = jax.nn.sigmoid(y).astype(o_ref.dtype)


@jax.jit
def basic_mlp_forward(x, w1, b1, w2, b2):
    """y = sigmoid(relu(x @ w1 + b1) @ w2 + b2), fused in one Pallas kernel.

    x:  (B, D) f32
    w1: (D, H) f32 (torch Linear weight transposed), b1: (H,) f32
    w2: (H, 1) f32,                                   b2: (1,) f32
    Returns (B, 1) f32.
    """
    B, D = x.shape
    H = w1.shape[1]
    tile_b = _pick_tile(B, D)
    grid = (pl.cdiv(B, tile_b),)

    b1_row = b1.reshape(1, H)
    w2_row = w2.reshape(H, OUT).T.reshape(1, H)   # (H, 1) -> (1, H) row
    b2_s = b2.reshape(OUT).astype(jnp.float32)

    out_row = pl.pallas_call(
        _basic_mlp_kernel,
        out_shape=jax.ShapeDtypeStruct((1, B), jnp.float32),     # lane-dense output
        grid=grid,
        in_specs=[
            pl.BlockSpec((tile_b, D), lambda i: (i, 0)),          # x: batch-tiled
            pl.BlockSpec((D, H), lambda i: (0, 0)),               # w1: resident
            pl.BlockSpec((1, H), lambda i: (0, 0)),               # b1 row: resident
            pl.BlockSpec((1, H), lambda i: (0, 0)),               # w2 row: resident
            pl.BlockSpec(memory_space=pltpu.MemorySpace.SMEM),    # b2 scalar
        ],
        out_specs=pl.BlockSpec((1, tile_b), lambda i: (0, i)),    # (1, TB) row per step
        compiler_params=pltpu.CompilerParams(
            dimension_semantics=("parallel",),
            vmem_limit_bytes=VMEM_LIMIT_BYTES,
        ),
    )(x, w1, b1_row, w2_row, b2_s)

    return out_row.reshape(B, OUT)                 # free layout plumbing in the wrapper


def init_params(key, input_dim):
    # Mimic torch.nn.Linear default init: U(-1/sqrt(fan_in), 1/sqrt(fan_in)).
    k1, k2, k3, k4 = jax.random.split(key, 4)
    bound1 = 1.0 / jnp.sqrt(input_dim)
    w1 = jax.random.uniform(k1, (input_dim, HIDDEN), jnp.float32, -bound1, bound1)
    b1 = jax.random.uniform(k2, (HIDDEN,), jnp.float32, -bound1, bound1)
    bound2 = 1.0 / jnp.sqrt(HIDDEN)
    w2 = jax.random.uniform(k3, (HIDDEN, OUT), jnp.float32, -bound2, bound2)
    b2 = jax.random.uniform(k4, (OUT,), jnp.float32, -bound2, bound2)
    return w1, b1, w2, b2


def _reference(x, w1, b1, w2, b2):
    return jax.nn.sigmoid(jnp.maximum(x @ w1 + b1, 0.0) @ w2 + b2)


if __name__ == "__main__":
    key = jax.random.PRNGKey(0)
    kx, kp, kx2 = jax.random.split(key, 3)

    # Small tabular-MLP-like shapes (input_dim = X_train.shape[1]).
    batch, input_dim = 8, 32
    x = jax.random.normal(kx, (batch, input_dim), dtype=jnp.float32)
    w1, b1, w2, b2 = init_params(kp, input_dim)

    out = jax.block_until_ready(basic_mlp_forward(x, w1, b1, w2, b2))
    ref = _reference(x, w1, b1, w2, b2)
    assert out.shape == (batch, OUT)
    assert jnp.allclose(out, ref, atol=1e-5, rtol=1e-5), float(jnp.max(jnp.abs(out - ref)))

    # Secondary check: multi-tile grid with a ragged (masked) last block.
    batch2 = 300
    x2 = jax.random.normal(kx2, (batch2, input_dim), dtype=jnp.float32)
    out2 = jax.block_until_ready(basic_mlp_forward(x2, w1, b1, w2, b2))
    ref2 = _reference(x2, w1, b1, w2, b2)
    assert out2.shape == (batch2, OUT)
    assert jnp.allclose(out2, ref2, atol=1e-5, rtol=1e-5), float(jnp.max(jnp.abs(out2 - ref2)))

    print("KERNEL_OK")
</pallas_src>

<mosaic_0001>
module attributes {stable_mosaic.version = 11 : i64} {
  func.func @_basic_mlp_kernel(%arg0: i32, %arg1: memref<8x32xf32, #tpu.memory_space<vmem>>, %arg2: memref<32x64xf32, #tpu.memory_space<vmem>>, %arg3: memref<1x64xf32, #tpu.memory_space<vmem>>, %arg4: memref<1x64xf32, #tpu.memory_space<vmem>>, %arg5: memref<1xf32, #tpu.memory_space<smem>>, %arg6: memref<1x8xf32, #tpu.memory_space<vmem>>) attributes {dimension_semantics = [#tpu.dimension_semantics<parallel>], iteration_bounds = array<i64: 1>, scalar_prefetch = 0 : i64, scratch_operands = 0 : i64, tpu.core_type = #tpu.core_type<tc>, window_params = [{transform_indices = @transform_0, window_bounds = array<i64: 8, 32>}, {pipeline_mode = #tpu.pipeline_mode<synchronous>, transform_indices = @transform_1, window_bounds = array<i64: 32, 64>}, {pipeline_mode = #tpu.pipeline_mode<synchronous>, transform_indices = @transform_2, window_bounds = array<i64: 1, 64>}, {pipeline_mode = #tpu.pipeline_mode<synchronous>, transform_indices = @transform_3, window_bounds = array<i64: 1, 64>}, {transform_indices = @transform_4, window_bounds = array<i64: 1>}, {transform_indices = @transform_5, window_bounds = array<i64: 1, 8>}]} {
    %c0 = arith.constant 0 : index
    %c0_0 = arith.constant 0 : index
    %0 = vector.load %arg1[%c0, %c0_0] : memref<8x32xf32, #tpu.memory_space<vmem>>, vector<8x32xf32>
    %c0_1 = arith.constant 0 : index
    %c0_2 = arith.constant 0 : index
    %1 = vector.load %arg2[%c0_1, %c0_2] : memref<32x64xf32, #tpu.memory_space<vmem>>, vector<32x64xf32>
    %cst = arith.constant dense<0.000000e+00> : vector<8x64xf32>
    %2 = tpu.matmul %0, %1, %cst {dimension_numbers = #tpu.dot_dimension_numbers<[1], [0], [0], [1], [0, 0, 1, 1], [], []>} : vector<8x32xf32>, vector<32x64xf32>, vector<8x64xf32> -> vector<8x64xf32>
    %c0_3 = arith.constant 0 : index
    %c0_4 = arith.constant 0 : index
    %3 = vector.load %arg3[%c0_3, %c0_4] : memref<1x64xf32, #tpu.memory_space<vmem>>, vector<1x64xf32>
    %4 = vector.broadcast %3 : vector<1x64xf32> to vector<8x64xf32>
    %5 = arith.addf %2, %4 : vector<8x64xf32>
    %cst_5 = arith.constant 0.000000e+00 : f32
    %6 = vector.broadcast %cst_5 : f32 to vector<8x64xf32>
    %7 = arith.maximumf %5, %6 : vector<8x64xf32>
    %c0_6 = arith.constant 0 : index
    %c0_7 = arith.constant 0 : index
    %8 = vector.load %arg4[%c0_6, %c0_7] : memref<1x64xf32, #tpu.memory_space<vmem>>, vector<1x64xf32>
    %cst_8 = arith.constant dense<0.000000e+00> : vector<1x8xf32>
    %9 = tpu.matmul %8, %7, %cst_8 {dimension_numbers = #tpu.dot_dimension_numbers<[1], [1], [0], [0], [0, 0, 1, 0], [], []>} : vector<1x64xf32>, vector<8x64xf32>, vector<1x8xf32> -> vector<1x8xf32>
    %c0_9 = arith.constant 0 : index
    %10 = memref.load %arg5[%c0_9] : memref<1xf32, #tpu.memory_space<smem>>
    %11 = vector.broadcast %10 : f32 to vector<1x8xf32>
    %12 = arith.addf %9, %11 : vector<1x8xf32>
    %13 = arith.negf %12 : vector<1x8xf32>
    %14 = math.exp %13 : vector<1x8xf32>
    %cst_10 = arith.constant 1.000000e+00 : f32
    %15 = vector.broadcast %cst_10 : f32 to vector<1x8xf32>
    %16 = arith.addf %15, %14 : vector<1x8xf32>
    %17 = arith.divf %15, %16 : vector<1x8xf32>
    %c0_11 = arith.constant 0 : index
    %c0_12 = arith.constant 0 : index
    %18 = vector.load %arg6[%c0_11, %c0_12] : memref<1x8xf32, #tpu.memory_space<vmem>>, vector<1x8xf32>
    tpu.vector_store %arg6[%c0_11, %c0_12], %17 {strides = array<i32>} : memref<1x8xf32, #tpu.memory_space<vmem>>, vector<1x8xf32>,
    return
  }
  func.func @transform_0(%arg0: i32) -> (i32, i32) {
    %c0_i32 = arith.constant 0 : i32
    %c0_i32_0 = arith.constant 0 : i32
    return %arg0, %c0_i32 : i32, i32
  }
  func.func @transform_1(%arg0: i32) -> (i32, i32) {
    %c0_i32 = arith.constant 0 : i32
    %c0_i32_0 = arith.constant 0 : i32
    %c0_i32_1 = arith.constant 0 : i32
    return %c0_i32, %c0_i32_0 : i32, i32
  }
  func.func @transform_2(%arg0: i32) -> (i32, i32) {
    %c0_i32 = arith.constant 0 : i32
    %c0_i32_0 = arith.constant 0 : i32
    %c0_i32_1 = arith.constant 0 : i32
    return %c0_i32, %c0_i32_0 : i32, i32
  }
  func.func @transform_3(%arg0: i32) -> (i32, i32) {
    %c0_i32 = arith.constant 0 : i32
    %c0_i32_0 = arith.constant 0 : i32
    %c0_i32_1 = arith.constant 0 : i32
    return %c0_i32, %c0_i32_0 : i32, i32
  }
  func.func @transform_4(%arg0: i32) -> i32 {
    %c0_i32 = arith.constant 0 : i32
    %c0_i32_0 = arith.constant 0 : i32
    return %c0_i32 : i32
  }
  func.func @transform_5(%arg0: i32) -> (i32, i32) {
    %c0_i32 = arith.constant 0 : i32
    %c0_i32_0 = arith.constant 0 : i32
    return %c0_i32, %arg0 : i32, i32
  }
}

</mosaic_0001>

<bundles_post_ra>
// kernel: basic_mlp_forward.1
= control target key start
LH: loop header
LB: loop body
LE: loop exit
PB: predicated region body
PF: predicated region fallthrough
CT: control target
= control target key end

     0   :  { %11 = vsyncpa [#allocation4], 0  ;;  %s392_s0 = inlined_call_operand.vmem [shape: f32[8,32], index: 0, kind: input, shape index: {}]   ;;  %s393_s1 = inlined_call_operand.hbm [shape: f32[32,64], index: 1, kind: input, shape index: {}]   ;;  %s394_s2 = inlined_call_operand.vmem [shape: f32[1,64], index: 2, kind: input, shape index: {}]   ;;  %s395_s3 = inlined_call_operand.vmem [shape: f32[1,64], index: 3, kind: input, shape index: {}]   ;;  %s396_s4 = inlined_call_operand.<no memory space> [shape: f32[1], index: 4, kind: input, shape index: {}]   ;;  %s397_s5 = inlined_call_operand.hbm [shape: f32[1,8], index: 5, kind: output, shape index: {}]  }
   0x1   :  { %12 = vsyncpa [#allocation5], 0  ;;  %s319_s18 = smov [#allocation3]   ;;  %s271_s22 = scalar_lea.hbm %s393_s1, 512 }
   0x2   :  { %s20_s19 = sshll.u32 %s319_s18, 4  ;;  %p272_p0 = scmp.ne.s32.totalorder %s393_s1, %s271_s22  ;;  %s21_s19 = int_to_ptr.vmem [resolvable:$true] %s20_s19 }
   0x3   :  { %p275_p1 = scmp.lt.u32.totalorder %s271_s22, %s393_s1 }
   0x5   :  { %p277_p2 = pnand %p275_p1, %p272_p0 }
   0x7   :  { %280 = shalt.err (!%p277_p2)
}
   0x8   :  { %s281_s27 = scalar_lea.vmem %s21_s19, 512  ;;  %p286_p4 = scmp.lt.s32.totalorder %s21_s19, %s21_s19 }
   0x9   :  { %p282_p3 = scmp.ne.s32.totalorder %s21_s19, %s281_s27  ;;  %p287_p5 = scmp.lt.s32.totalorder %s281_s27, %s281_s27 }
   0xb   :  { %p288_p6 = por %p287_p5, %p286_p4 }
   0xd   :  { %p289_p7 = pnand %p288_p6, %p282_p3 }
   0xf   :  { %292 = shalt.err (!%p289_p7)
}
  0x10   :  { %s320_s28 = smov 128   ;;  %s321_s29 = smov 8  }
  0x11   :  { %26 = dma.hbm_to_vmem [thread:$0]  %s393_s1, 512, %s21_s19, [#allocation4], %s320_s28, %s320_s28, %s321_s29  }
  0x12   :  { %315 = dma.done.wait [#allocation4], 512  }
  0x13   :  { %316 = vsyncadd [#allocation4], 4294966784  ;;  %v322_v0 = vmov 0.0|0.0   ;;  %vm323_vm0 = vmmov 0   ;;  %v324_v1 = vmov 0.0   ;;  %v37_v2 = vld [vmem:[#allocation3] sm:$0xff]  ;;  %v125_v15 = vstv %s396_s4 }
  0x14   :  { %254 = vmatprep.subr.bf16.mxu0 %v322_v0  ;;  %246 = vmatprep.mubr.msk.f32.mxu0 %vm323_vm0, %v324_v1  ;;  %v38_v3 = vld [vmem:[#allocation3 + $0x8] sm:$0xff]  ;;  %v39_v4 = vld [vmem:[#allocation3 + $0x10] sm:$0xff]  ;;  %v40_v6 = vld [vmem:[#allocation3 + $0x18] sm:$0xff]  ;;  %vm48_vm1 = vcmask 261120   ;;  %vm126_vm2 = vcmask 523264   ;;  %vm209_vm3 = vcmask 57344  }
  0x15   :  { %249 = vmatprep.subr.mxu1 %v324_v1  ;;  %251 = vmatprep.mubr.msk.f32.mxu1 %vm323_vm0, %v324_v1  ;;  %v255_v5 = vpack.c.bf16 %v38_v3, %v37_v2  ;;  %v258_v7 = vpack.c.bf16 %v40_v6, %v39_v4  ;;  %v36_v8 = vld [vmem:[%s392_s0] sm:$0xff]  ;;  %s325_s0 = smov [#allocation6]  }
  0x16   :  { %v226_v9 = vld [vmem:[%s394_s2] ss:$0 sm:$0xff]  ;;  %s217_s2 = sshll.u32 %s325_s0, 4  ;;  %s218_s2 = int_to_ptr.vmem [resolvable:$true] %s217_s2 }
  0x17   :  { %256 = vmatpush3.bf16.msra.mxu0 %v255_v5  ;;  %v123_v14 = vld [vmem:[%s395_s3] sm:$0x1]  ;;  %s293_s3 = scalar_lea.vmem %s218_s2, 16  ;;  %s297_s14 = scalar_lea.vmem %s218_s2, 32 }
  0x18   :  { %257 = vmatprep.subr.bf16.mxu0 %v322_v0  ;;  %p294_p8 = scmp.ne.s32.totalorder %s218_s2, %s293_s3  ;;  %p298_p9 = scmp.lt.s32.totalorder %s218_s2, %s218_s2 }
  0x19   :  { %p299_p10 = scmp.lt.s32.totalorder %s297_s14, %s293_s3 }
  0x1b   :  { %259 = vmatpush3.bf16.msra.mxu0 %v258_v7  ;;  %p300_p11 = por %p299_p10, %p298_p9 }
  0x1d   :  { %p301_p12 = pnand %p300_p11, %p294_p8 }
  0x1e   :  { %247 = vmatmul.mubr.msk.f32.vlgmr.msra.gmra.mrb[0].mxu0 %vm48_vm1, %v36_v8 }
  0xf1   :  { %v118_v10 = vpop.f32.mrb[0].mxu0 }
  0xf2   :  { %v119_v11 = vadd.f32 %v226_v9, %v118_v10  ;;  %v248_v12 = vpop.f32.mrb[1].mxu0 }
  0xf4   :  { %v122_v13 = vmax.f32 %v119_v11, 0.0 }
  0xf6   :  { %250 = vmatpush3.xpose.msk.msra.mxu1 %vm126_vm2, %v122_v13 }
  0xf9   :  { %252 = vmatmul.mubr.msk.f32.vlgmr.msra.gmra.mrb[0].mxu1 %vm126_vm2, %v123_v14 }
 0x1cc   :  { %v199_v16 = vpop.f32.mrb[0].mxu1 }
 0x1cd   :  { %v200_v17 = vadd.f32 %v199_v16, %v125_v15  ;;  %v253_v18 = vpop.f32.mrb[1].mxu1 }
 0x1cf   :  { %v230_v19 = vmul.f32 -1.442695, %v200_v17 }
 0x1d1   :  { %267 = vpow2.f32 %v230_v19 }
 0x1db   :  { %v268_v20 = vpop.eup %267 }
 0x1dc   :  { %v206_v21 = vadd.f32 1.0, %v268_v20 }
 0x1de   :  { %269 = vrcp.f32 %v206_v21 }
 0x1e8   :  { %v270_v22 = vpop.eup %269 }
 0x1e9   :  { %210 = vst.msk [vmem:[#allocation6] sm:$0x1] %vm209_vm3, %v270_v22 }
 0x1ea   :  { %304 = shalt.err (!%p301_p12)
}
 0x1eb   :  { %s305_s16 = scalar_lea.hbm %s397_s5, 16 }
 0x1ec   :  { %p306_p13 = scmp.ne.s32.totalorder %s397_s5, %s305_s16  ;;  %p309_p0 = scmp.lt.u32.totalorder %s305_s16, %s397_s5 }
 0x1ee   :  { %p311_p1 = pnand %p309_p0, %p306_p13 }
 0x1f0   :  { %314 = shalt.err (!%p311_p1)
}
 0x1f1   :  { %220 = dma.vmem_to_hbm [thread:$0]  %s218_s2, 16, %s397_s5, [#allocation5]  }
 0x1f2   :  { %317 = dma.done.wait [#allocation5], 16  }
 0x1f3   :  { %318 = vsyncadd [#allocation5], 4294967280 }
 0x1f4   :  { %224 = vsyncpa [#allocation4], 1 }
 0x1f5   :  { %225 = vsyncpa [#allocation5], 1 }

</bundles_post_ra>
